<compile_context>
chip_gen: v7x
topology: tpu7x:2x2x1
jax: 0.10.0
libtpu: 0.0.40
codegen_flags: <defaults>
</compile_context>

<pallas_src>
import functools

import numpy as np
import jax
import jax.numpy as jnp
from jax.experimental import pallas as pl
from jax.experimental.pallas import tpu as pltpu

K = 4  # number of AffineConstantFlow layers in the NormalizingFlow


def nf_forward_kernel(x_ref, s_ref, t_ref, zs_ref, plp_ref, *,
                      dim, n_groups, n_flows, store_all, half_const):
    """One batch tile of the whole flow stack + prior log-prob.

    Packed layout: each 128-lane row holds n_groups samples of `dim` features.
      x_ref  : (TM, L)          input samples, L = n_groups * dim (mult. of 128)
      s_ref  : (K, L)           per-flow log-scale params (lane-tiled, resident)
      t_ref  : (K, L)           per-flow shift params (lane-tiled, resident)
      zs_ref : (K or 1, TM, L)  per-flow outputs (or just the final z)
      plp_ref: (n_groups, TM)   prior log-prob, lane-dense transposed layout
    """
    es = jnp.exp(s_ref[...])          # hoisted: one EUP exp over (K, L)
    ts = t_ref[...]
    x = x_ref[...]                    # f32 working copy

    if store_all:
        for k in range(n_flows):      # K is small & static -> unrolled
            x = x * es[k:k + 1, :] + ts[k:k + 1, :]   # AffineConstantFlow
            zs_ref[k, :, :] = x.astype(zs_ref.dtype)
    else:
        # Fold all K affines into one (scale, shift) on the tiny param arrays,
        # then a single mul+add on the big tile and one writeback.
        e_tot = es[0:1, :]
        t_tot = ts[0:1, :]
        for k in range(1, n_flows):
            t_tot = t_tot * es[k:k + 1, :] + ts[k:k + 1, :]
            e_tot = e_tot * es[k:k + 1, :]
        x = x * e_tot + t_tot
        zs_ref[0, :, :] = x.astype(zs_ref.dtype)

    # prior.log_prob(z_final) = -0.5 * sum_d z_d^2 - 0.5*dim*log(2*pi),
    # computed as ONE MXU segment-sum: seg_t is a (n_groups, L) block-diagonal
    # 0/1 matrix, dot_general contracts the lane axis (same NT pattern as
    # q @ k^T), giving a lane-dense (n_groups, TM) result -> one unmasked
    # full-block store.  No per-group XLU reductions, no 1-lane masked stores.
    lane_w = n_groups * dim
    lane = jax.lax.broadcasted_iota(jnp.int32, (n_groups, lane_w), 1)
    row = jax.lax.broadcasted_iota(jnp.int32, (n_groups, lane_w), 0)
    seg_t = ((lane >= row * dim) & (lane < (row + 1) * dim)).astype(jnp.float32)

    xx = x * x                                                  # (TM, L)
    ssq_t = jax.lax.dot_general(                                # (n_groups, TM)
        seg_t, xx, (((1,), (1,)), ((), ())),
        preferred_element_type=jnp.float32)
    plp_ref[...] = -0.5 * ssq_t - jnp.float32(half_const)


def _round_up(a, b):
    return ((a + b - 1) // b) * b


def _pad_feature_dim(dim):
    """Lane-friendly padded feature size: next power of two (a divisor of 128)
    when dim <= 128, otherwise the next multiple of 128."""
    if dim <= 128:
        d = 1
        while d < dim:
            d *= 2
        return d
    return _round_up(dim, 128)


def normalizing_flow_model_forward(x, s_params, t_params, *,
                                   block_rows=None,
                                   store_intermediates=True,
                                   zs_dtype=jnp.float32):
    """Pallas-backed NormalizingFlowModel.forward (AffineConstantFlow stack +
    standard-normal prior).

    Returns (zs_stack, prior_logprob, log_det):
      zs_stack      : (K, m, dim) outputs of every flow (the PyTorch zs[1:];
                      zs[0] is the input x which the caller already holds).
                      (1, m, dim) when store_intermediates=False.
      prior_logprob : (m,) float32
      log_det       : (m,) float32.  NOTE: computed in the wrapper as the
                      batch-independent constant sum(s_params); this is only
                      valid for AffineConstantFlow-style flows.
    """
    m, dim = x.shape
    n_flows = s_params.shape[0]
    x = x.astype(jnp.float32)
    s_params = s_params.astype(jnp.float32)
    t_params = t_params.astype(jnp.float32)

    # --- lane-dense packing: pad dim to a divisor/multiple of 128 and pack
    #     r_pack samples per 128-lane row (all loads/stores full-lane). -------
    dim_pad = _pad_feature_dim(dim)
    r_pack = max(1, 128 // dim_pad)
    lane_w = r_pack * dim_pad                      # always a multiple of 128
    mr = pl.cdiv(m, r_pack)                        # packed rows needed

    # --- tile sizing ---------------------------------------------------------
    # Default targets >= ~8 grid steps (v7x: keeps both TensorCores busy via
    # dimension_semantics=("parallel",)), capped at 1024 rows: double-buffered
    # f32 working set ~ 2*(K+1)*1024*128*4 B ~ 5.3 MiB, safely inside v5e's
    # 16 MiB scoped-VMEM default, v6e's 32 MiB and v7x's 64 MiB physical VMEM.
    if block_rows is None:
        block_rows = min(1024, max(128, _round_up(mr // 8, 128)))
    if block_rows >= mr:
        block_rows = _round_up(mr, 8)              # single full-extent tile
    else:
        # multiple of 128 so the transposed plp block stays lane-dense
        block_rows = max(128, _round_up(block_rows, 128))
    mr_pad = _round_up(mr, block_rows)             # no ragged last tile
    m_pad = mr_pad * r_pack

    # --- wrapper-side re-layouts (pads are zeros; packed reshape is contiguous)
    x_pad = jnp.zeros((m_pad, dim_pad), jnp.float32).at[:m, :dim].set(x)
    x_packed = x_pad.reshape(mr_pad, lane_w)
    pad_cols = dim_pad - dim
    s_tiled = jnp.tile(jnp.pad(s_params, ((0, 0), (0, pad_cols))), (1, r_pack))
    t_tiled = jnp.tile(jnp.pad(t_params, ((0, 0), (0, pad_cols))), (1, r_pack))

    n_store = n_flows if store_intermediates else 1
    grid = (mr_pad // block_rows,)

    kernel = functools.partial(
        nf_forward_kernel, dim=dim_pad, n_groups=r_pack, n_flows=n_flows,
        store_all=store_intermediates,
        half_const=float(0.5 * dim * np.log(2.0 * np.pi)))

    zs_packed, plp_t = pl.pallas_call(
        kernel,
        out_shape=(
            jax.ShapeDtypeStruct((n_store, mr_pad, lane_w), zs_dtype),
            jax.ShapeDtypeStruct((r_pack, mr_pad), jnp.float32),
        ),
        grid=grid,
        in_specs=[
            pl.BlockSpec((block_rows, lane_w), lambda i: (i, 0)),
            pl.BlockSpec((n_flows, lane_w), lambda i: (0, 0)),   # resident
            pl.BlockSpec((n_flows, lane_w), lambda i: (0, 0)),   # resident
        ],
        out_specs=(
            pl.BlockSpec((n_store, block_rows, lane_w), lambda i: (0, i, 0)),
            pl.BlockSpec((r_pack, block_rows), lambda i: (0, i)),  # lane-dense
        ),
        compiler_params=pltpu.CompilerParams(
            dimension_semantics=("parallel",)),   # v7x: shard batch across TCs
    )(x_packed, s_tiled, t_tiled)

    zs_stack = zs_packed.reshape(n_store, m_pad, dim_pad)
    if m_pad != m or dim_pad != dim:
        zs_stack = zs_stack[:, :m, :dim]
    prior_logprob = plp_t.T.reshape(m_pad)
    if m_pad != m:
        prior_logprob = prior_logprob[:m]
    # Batch-independent constant (AffineConstantFlow only).
    log_det = jnp.broadcast_to(jnp.sum(s_params).astype(jnp.float32), (m,))
    return zs_stack, prior_logprob, log_det


def _ref_forward(x, s_params, t_params):
    """Pure-JAX reference mirroring the PyTorch semantics."""
    z = x
    zs = [x]
    log_det = jnp.zeros(x.shape[0], jnp.float32)
    for k in range(s_params.shape[0]):
        z = z * jnp.exp(s_params[k]) + t_params[k]
        log_det = log_det + jnp.sum(s_params[k])
        zs.append(z)
    prior_lp = (-0.5 * jnp.sum(z * z, axis=1)
                - 0.5 * x.shape[1] * np.log(2.0 * np.pi))
    return zs, prior_lp, log_det


if __name__ == "__main__":
    key = jax.random.PRNGKey(0)
    kx, ks, kt = jax.random.split(key, 3)

    m, dim = 2048, 16
    x = jax.random.normal(kx, (m, dim), dtype=jnp.float32)
    s_params = 0.1 * jax.random.normal(ks, (K, dim), dtype=jnp.float32)
    t_params = 0.1 * jax.random.normal(kt, (K, dim), dtype=jnp.float32)

    zs_ref, plp_ref, ld_ref = _ref_forward(x, s_params, t_params)

    # 1) default path: mr=256, block_rows=128 -> grid=(2,) (pipelined tiles).
    zs_stack, plp, ld = normalizing_flow_model_forward(x, s_params, t_params)
    jax.block_until_ready((zs_stack, plp, ld))
    for i in range(K):
        np.testing.assert_allclose(np.asarray(zs_stack[i]),
                                   np.asarray(zs_ref[i + 1]),
                                   rtol=1e-5, atol=1e-5)
    # prior-logprob reduction runs on the MXU; tolerance allows for MXU
    # operand rounding while still catching any grouping/indexing bug.
    np.testing.assert_allclose(np.asarray(plp), np.asarray(plp_ref),
                               rtol=5e-3, atol=5e-3)
    np.testing.assert_allclose(np.asarray(ld), np.asarray(ld_ref),
                               rtol=1e-5, atol=1e-5)

    # 2) final-z-only path (folded affine, single writeback).
    zs_last, plp2, ld2 = normalizing_flow_model_forward(
        x, s_params, t_params, block_rows=128, store_intermediates=False)
    jax.block_until_ready((zs_last, plp2, ld2))
    np.testing.assert_allclose(np.asarray(zs_last[0]), np.asarray(zs_ref[-1]),
                               rtol=1e-5, atol=1e-5)
    np.testing.assert_allclose(np.asarray(plp2), np.asarray(plp_ref),
                               rtol=5e-3, atol=5e-3)
    np.testing.assert_allclose(np.asarray(ld2), np.asarray(ld_ref),
                               rtol=1e-5, atol=1e-5)

    # 3) bf16 zs writeback (halves the dominant HBM write traffic).
    zs_bf16, plp3, _ = normalizing_flow_model_forward(
        x, s_params, t_params, zs_dtype=jnp.bfloat16)
    jax.block_until_ready((zs_bf16, plp3))
    for i in range(K):
        np.testing.assert_allclose(np.asarray(zs_bf16[i].astype(jnp.float32)),
                                   np.asarray(zs_ref[i + 1]),
                                   rtol=1e-2, atol=1e-2)
    np.testing.assert_allclose(np.asarray(plp3), np.asarray(plp_ref),
                               rtol=5e-3, atol=5e-3)

    # 4) ragged shapes exercising the padding path (dim=5 -> padded to 8,
    #    m=100 -> padded rows; single full-extent tile).
    m2, dim2 = 100, 5
    x2 = jax.random.normal(jax.random.PRNGKey(1), (m2, dim2), dtype=jnp.float32)
    s2 = 0.1 * jax.random.normal(jax.random.PRNGKey(2), (K, dim2),
                                 dtype=jnp.float32)
    t2 = 0.1 * jax.random.normal(jax.random.PRNGKey(3), (K, dim2),
                                 dtype=jnp.float32)
    zs2_ref, plp2_ref, ld2_ref = _ref_forward(x2, s2, t2)
    zs2, plpp, ldd = normalizing_flow_model_forward(x2, s2, t2)
    jax.block_until_ready((zs2, plpp, ldd))
    for i in range(K):
        np.testing.assert_allclose(np.asarray(zs2[i]),
                                   np.asarray(zs2_ref[i + 1]),
                                   rtol=1e-5, atol=1e-5)
    np.testing.assert_allclose(np.asarray(plpp), np.asarray(plp2_ref),
                               rtol=5e-3, atol=5e-3)
    np.testing.assert_allclose(np.asarray(ldd), np.asarray(ld2_ref),
                               rtol=1e-5, atol=1e-5)

    print("KERNEL_OK")
</pallas_src>

<mosaic_0001>
module attributes {stable_mosaic.version = 11 : i64} {
  func.func @nf_forward_kernel(%arg0: i32, %arg1: memref<128x128xf32, #tpu.memory_space<vmem>>, %arg2: memref<4x128xf32, #tpu.memory_space<vmem>>, %arg3: memref<4x128xf32, #tpu.memory_space<vmem>>, %arg4: memref<4x128x128xf32, #tpu.memory_space<vmem>>, %arg5: memref<8x128xf32, #tpu.memory_space<vmem>>) attributes {dimension_semantics = [#tpu.dimension_semantics<parallel>], iteration_bounds = array<i64: 2>, scalar_prefetch = 0 : i64, scratch_operands = 0 : i64, tpu.core_type = #tpu.core_type<tc>, window_params = [{transform_indices = @transform_0, window_bounds = array<i64: 128, 128>}, {pipeline_mode = #tpu.pipeline_mode<synchronous>, transform_indices = @transform_1, window_bounds = array<i64: 4, 128>}, {pipeline_mode = #tpu.pipeline_mode<synchronous>, transform_indices = @transform_2, window_bounds = array<i64: 4, 128>}, {transform_indices = @transform_3, window_bounds = array<i64: 4, 128, 128>}, {transform_indices = @transform_4, window_bounds = array<i64: 8, 128>}]} {
    %c0 = arith.constant 0 : index
    %c0_0 = arith.constant 0 : index
    %0 = vector.load %arg2[%c0, %c0_0] : memref<4x128xf32, #tpu.memory_space<vmem>>, vector<4x128xf32>
    %1 = math.exp %0 : vector<4x128xf32>
    %c0_1 = arith.constant 0 : index
    %c0_2 = arith.constant 0 : index
    %2 = vector.load %arg3[%c0_1, %c0_2] : memref<4x128xf32, #tpu.memory_space<vmem>>, vector<4x128xf32>
    %c0_3 = arith.constant 0 : index
    %c0_4 = arith.constant 0 : index
    %3 = vector.load %arg1[%c0_3, %c0_4] : memref<128x128xf32, #tpu.memory_space<vmem>>, vector<128x128xf32>
    %4 = vector.extract_strided_slice %1 {offsets = [0, 0], sizes = [1, 128], strides = [1, 1]} : vector<4x128xf32> to vector<1x128xf32>
    %5 = vector.broadcast %4 : vector<1x128xf32> to vector<128x128xf32>
    %6 = arith.mulf %3, %5 : vector<128x128xf32>
    %7 = vector.extract_strided_slice %2 {offsets = [0, 0], sizes = [1, 128], strides = [1, 1]} : vector<4x128xf32> to vector<1x128xf32>
    %8 = vector.broadcast %7 : vector<1x128xf32> to vector<128x128xf32>
    %9 = arith.addf %6, %8 : vector<128x128xf32>
    %c0_5 = arith.constant 0 : index
    %c0_6 = arith.constant 0 : index
    %c0_7 = arith.constant 0 : index
    %10 = vector.load %arg4[%c0_5, %c0_6, %c0_7] : memref<4x128x128xf32, #tpu.memory_space<vmem>>, vector<1x128x128xf32>
    %11 = vector.shape_cast %10 : vector<1x128x128xf32> to vector<128x128xf32>
    %12 = vector.shape_cast %9 : vector<128x128xf32> to vector<1x128x128xf32>
    tpu.vector_store %arg4[%c0_5, %c0_6, %c0_7], %12 {strides = array<i32>} : memref<4x128x128xf32, #tpu.memory_space<vmem>>, vector<1x128x128xf32>,
    %13 = vector.extract_strided_slice %1 {offsets = [1, 0], sizes = [1, 128], strides = [1, 1]} : vector<4x128xf32> to vector<1x128xf32>
    %14 = vector.broadcast %13 : vector<1x128xf32> to vector<128x128xf32>
    %15 = arith.mulf %9, %14 : vector<128x128xf32>
    %16 = vector.extract_strided_slice %2 {offsets = [1, 0], sizes = [1, 128], strides = [1, 1]} : vector<4x128xf32> to vector<1x128xf32>
    %17 = vector.broadcast %16 : vector<1x128xf32> to vector<128x128xf32>
    %18 = arith.addf %15, %17 : vector<128x128xf32>
    %c1 = arith.constant 1 : index
    %c0_8 = arith.constant 0 : index
    %c0_9 = arith.constant 0 : index
    %19 = vector.load %arg4[%c1, %c0_8, %c0_9] : memref<4x128x128xf32, #tpu.memory_space<vmem>>, vector<1x128x128xf32>
    %20 = vector.shape_cast %19 : vector<1x128x128xf32> to vector<128x128xf32>
    %21 = vector.shape_cast %18 : vector<128x128xf32> to vector<1x128x128xf32>
    tpu.vector_store %arg4[%c1, %c0_8, %c0_9], %21 {strides = array<i32>} : memref<4x128x128xf32, #tpu.memory_space<vmem>>, vector<1x128x128xf32>,
    %22 = vector.extract_strided_slice %1 {offsets = [2, 0], sizes = [1, 128], strides = [1, 1]} : vector<4x128xf32> to vector<1x128xf32>
    %23 = vector.broadcast %22 : vector<1x128xf32> to vector<128x128xf32>
    %24 = arith.mulf %18, %23 : vector<128x128xf32>
    %25 = vector.extract_strided_slice %2 {offsets = [2, 0], sizes = [1, 128], strides = [1, 1]} : vector<4x128xf32> to vector<1x128xf32>
    %26 = vector.broadcast %25 : vector<1x128xf32> to vector<128x128xf32>
    %27 = arith.addf %24, %26 : vector<128x128xf32>
    %c2 = arith.constant 2 : index
    %c0_10 = arith.constant 0 : index
    %c0_11 = arith.constant 0 : index
    %28 = vector.load %arg4[%c2, %c0_10, %c0_11] : memref<4x128x128xf32, #tpu.memory_space<vmem>>, vector<1x128x128xf32>
    %29 = vector.shape_cast %28 : vector<1x128x128xf32> to vector<128x128xf32>
    %30 = vector.shape_cast %27 : vector<128x128xf32> to vector<1x128x128xf32>
    tpu.vector_store %arg4[%c2, %c0_10, %c0_11], %30 {strides = array<i32>} : memref<4x128x128xf32, #tpu.memory_space<vmem>>, vector<1x128x128xf32>,
    %31 = vector.extract_strided_slice %1 {offsets = [3, 0], sizes = [1, 128], strides = [1, 1]} : vector<4x128xf32> to vector<1x128xf32>
    %32 = vector.broadcast %31 : vector<1x128xf32> to vector<128x128xf32>
    %33 = arith.mulf %27, %32 : vector<128x128xf32>
    %34 = vector.extract_strided_slice %2 {offsets = [3, 0], sizes = [1, 128], strides = [1, 1]} : vector<4x128xf32> to vector<1x128xf32>
    %35 = vector.broadcast %34 : vector<1x128xf32> to vector<128x128xf32>
    %36 = arith.addf %33, %35 : vector<128x128xf32>
    %c3 = arith.constant 3 : index
    %c0_12 = arith.constant 0 : index
    %c0_13 = arith.constant 0 : index
    %37 = vector.load %arg4[%c3, %c0_12, %c0_13] : memref<4x128x128xf32, #tpu.memory_space<vmem>>, vector<1x128x128xf32>
    %38 = vector.shape_cast %37 : vector<1x128x128xf32> to vector<128x128xf32>
    %39 = vector.shape_cast %36 : vector<128x128xf32> to vector<1x128x128xf32>
    tpu.vector_store %arg4[%c3, %c0_12, %c0_13], %39 {strides = array<i32>} : memref<4x128x128xf32, #tpu.memory_space<vmem>>, vector<1x128x128xf32>,
    %40 = tpu.iota {dimensions = array<i32: 1>} : vector<8x128xi32>
    %41 = tpu.iota {dimensions = array<i32: 0>} : vector<8x128xi32>
    %c16_i32 = arith.constant 16 : i32
    %42 = vector.broadcast %c16_i32 : i32 to vector<8x128xi32>
    %43 = arith.muli %41, %42 : vector<8x128xi32>
    %44 = arith.cmpi sge, %40, %43 : vector<8x128xi32>
    %c1_i32 = arith.constant 1 : i32
    %45 = vector.broadcast %c1_i32 : i32 to vector<8x128xi32>
    %46 = arith.addi %41, %45 : vector<8x128xi32>
    %c16_i32_14 = arith.constant 16 : i32
    %47 = vector.broadcast %c16_i32_14 : i32 to vector<8x128xi32>
    %48 = arith.muli %46, %47 : vector<8x128xi32>
    %49 = arith.cmpi slt, %40, %48 : vector<8x128xi32>
    %50 = arith.andi %44, %49 : vector<8x128xi1>
    %51 = arith.extui %50 : vector<8x128xi1> to vector<8x128xi32>
    %52 = arith.sitofp %51 : vector<8x128xi32> to vector<8x128xf32>
    %53 = arith.mulf %36, %36 : vector<128x128xf32>
    %cst = arith.constant dense<0.000000e+00> : vector<8x128xf32>
    %54 = tpu.matmul %52, %53, %cst {dimension_numbers = #tpu.dot_dimension_numbers<[1], [1], [0], [0], [0, 0, 1, 0], [], []>} : vector<8x128xf32>, vector<128x128xf32>, vector<8x128xf32> -> vector<8x128xf32>
    %cst_15 = arith.constant -5.000000e-01 : f32
    %55 = vector.broadcast %cst_15 : f32 to vector<8x128xf32>
    %56 = arith.mulf %55, %54 : vector<8x128xf32>
    %cst_16 = arith.constant 14.7030163 : f32
    %57 = vector.broadcast %cst_16 : f32 to vector<8x128xf32>
    %58 = arith.subf %56, %57 : vector<8x128xf32>
    %c0_17 = arith.constant 0 : index
    %c0_18 = arith.constant 0 : index
    %59 = vector.load %arg5[%c0_17, %c0_18] : memref<8x128xf32, #tpu.memory_space<vmem>>, vector<8x128xf32>
    tpu.vector_store %arg5[%c0_17, %c0_18], %58 {strides = array<i32>} : memref<8x128xf32, #tpu.memory_space<vmem>>, vector<8x128xf32>,
    return
  }
  func.func @transform_0(%arg0: i32) -> (i32, i32) {
    %c0_i32 = arith.constant 0 : i32
    %c0_i32_0 = arith.constant 0 : i32
    return %arg0, %c0_i32 : i32, i32
  }
  func.func @transform_1(%arg0: i32) -> (i32, i32) {
    %c0_i32 = arith.constant 0 : i32
    %c0_i32_0 = arith.constant 0 : i32
    %c0_i32_1 = arith.constant 0 : i32
    return %c0_i32, %c0_i32_0 : i32, i32
  }
  func.func @transform_2(%arg0: i32) -> (i32, i32) {
    %c0_i32 = arith.constant 0 : i32
    %c0_i32_0 = arith.constant 0 : i32
    %c0_i32_1 = arith.constant 0 : i32
    return %c0_i32, %c0_i32_0 : i32, i32
  }
  func.func @transform_3(%arg0: i32) -> (i32, i32, i32) {
    %c0_i32 = arith.constant 0 : i32
    %c0_i32_0 = arith.constant 0 : i32
    %c0_i32_1 = arith.constant 0 : i32
    return %c0_i32, %arg0, %c0_i32_0 : i32, i32, i32
  }
  func.func @transform_4(%arg0: i32) -> (i32, i32) {
    %c0_i32 = arith.constant 0 : i32
    %c0_i32_0 = arith.constant 0 : i32
    return %c0_i32, %arg0 : i32, i32
  }
}

</mosaic_0001>

<bundles_post_ra>
// kernel: tpu_custom_call.1
= control target key start
LH: loop header
LB: loop body
LE: loop exit
PB: predicated region body
PF: predicated region fallthrough
CT: control target
= control target key end

     0   :  { %10 = vsyncpa [#allocation3], 0  ;;  %s1660_s0 = inlined_call_operand.hbm [shape: f32[256,128], index: 0, kind: input, shape index: {}]   ;;  %s1661_s1 = inlined_call_operand.hbm [shape: f32[4,128], index: 1, kind: input, shape index: {}]   ;;  %s1662_s2 = inlined_call_operand.vmem [shape: f32[4,128], index: 2, kind: input, shape index: {}]   ;;  %s1663_s3 = inlined_call_operand.hbm [shape: f32[4,256,128], index: 3, kind: output, shape index: {0}]   ;;  %s1664_s4 = inlined_call_operand.hbm [shape: f32[8,256], index: 4, kind: output, shape index: {1}]  }
   0x1   :  { %12 = vsyncpa [#allocation3 + $0x1], 0 }
   0x2   :  { %13 = vsyncpa [#allocation6], 0 }
   0x3   :  { %14 = vsyncpa [#allocation4], 0 }
   0x4   :  { %16 = vsyncpa [#allocation4 + $0x1], 0 }
   0x5   :  { %17 = vsyncpa [#allocation9], 0 }
   0x6   :  { %19 = vsyncpa [#allocation9 + $0x1], 0  ;;  %s1172_s15 = smov 0   ;;  %s1174_s16 = smov 0  }
   0x7   :  { %s1176_s17 = smov 0   ;;  %s1178_s18 = smov 0  }
   0x8 LB: > { %s1193_s19 = sadd.s32 4294967295, %s1129_s18   ;;  %s766_s20 = sadd.s32 4294967294, %s1129_s18   ;;  %s1129_s18 = sphi %s1178_s18, %s1693_s18   ;;  %s1125_s17 = sphi %s1176_s17, %s1692_s17   ;;  %s1121_s16 = sphi %s1174_s16, %s1691_s16   ;;  %s1117_s15 = sphi %s1172_s15, %s1690_s15  }
   0x9   : > { %s1197_s21 = sadd.s32 1, %s1129_s18   ;;  %s32_s22 = sadd.s32 1, %s1125_s17 }
   0xa   : > { %s29_s23 = ssub.s32 %s1129_s18, %s1197_s21  ;;  %p39_p0 = scmp.ne.s32.totalorder %s1125_s17, %s1121_s16 }
   0xb   : > { %p30_p1 = scmp.eq.s32.totalorder %s29_s23, 0  ;;  %p40_p2 = scmp.eq.s32.totalorder %s1129_s18, 0 }
   0xc   : > { %p45_p3 = scmp.ne.s32.totalorder %s1121_s16, %s1117_s15  ;;  %p1665_p4 = scmp.eq.s32.totalorder %s1193_s19, 0 }
   0xd   : > { %s1209_s24 = scalar_select %p30_p1, %s1125_s17, %s32_s22  }
   0xe   : > { %p1211_p5 = por %p40_p2, %p39_p0  ;;  %p1217_p6 = por %p1665_p4, %p45_p3 }
   0xf   : > { %p111_p7 = scmp.eq.s32.totalorder %s1193_s19, 1  ;;  %p117_p8 = scmp.eq.s32.totalorder %s766_s20, 1 }
  0x10   : > { %s1671_s26 = scalar_select %p1217_p6, 1, 0 }
  0x11   : > { %p767_p9 = scmp.ge.s32.totalorder %s1129_s18, 1  ;;  %p150_p10 = scmp.lt.s32.totalorder %s1129_s18, 3 }
  0x12   : > { %p1224_p11 = por %p111_p7, %p39_p0  ;;  %p1228_p12 = por %p117_p8, %p45_p3 }
  0x13   : > { %p1232_p13 = pnand %p767_p9, %p150_p10  ;;  %s1131_s30 = smov [#allocation5]  }
  0x14   : > { %s1672_s27 = scalar_select %p1224_p11, 1, 0 }
  0x15   : > { %s1673_s28 = scalar_select %p1228_p12, 1, 0 }
  0x16   : > { %s1674_s29 = scalar_select %p1232_p13, 1, 0 }
  0x17   : > { %p930_p2 = pneg %p1232_p13  ;;  %s163_s5 = sshll.u32 %s1131_s30, 4  ;;  %s164_s5 = int_to_ptr.vmem [resolvable:$true] %s163_s5 }
  0x18   : > { %p946_p4 = scmp.lt.s32.totalorder %s1129_s18, 2  ;;  %p1675_p0 = scmp.eq.s32.totalorder %s1193_s19, 0 }
  0x19   : > { %s177_s7 = sand.u32 1, %s1125_s17   ;;  %s997_s12 = scalar_lea.hbm %s1661_s1, 64 }
  0x1a   : > { %p1242_p7 = pnand %p930_p2, %p1675_p0  ;;  %p1249_p3 = pnand %p946_p4, %p1211_p5 }
  0x1b   : > { %s770_s9 = sshll.u32 %s177_s7, 7  ;;  %p998_p8 = scmp.ne.s32.totalorder %s1661_s1, %s997_s12 }
  0x1c   : > { %s1677_s8 = scalar_select %p1249_p3, 1, 0 }
  0x1d   : > { %p999_p9 = pneg %p1242_p7  ;;  %p1004_p4 = scmp.lt.u32.totalorder %s997_s12, %s1661_s1 }
  0x1f   : > { %p1000_p10 = pnand %p999_p9, %p998_p8 }
  0x21   : > { %p1001_p2 = pneg %p1000_p10 }
  0x23   : > { %p1006_p5 = pnand %p1004_p4, %p1001_p2 }
  0x25   : > { %1009 = shalt.err (!%p1006_p5)
}
  0x26   : > { %s1010_s23 = scalar_lea.vmem %s164_s5, 64  ;;  %p1018_p11 = scmp.lt.s32.totalorder %s164_s5, %s164_s5 }
  0x27   : > { %p1011_p0 = scmp.ne.s32.totalorder %s164_s5, %s1010_s23  ;;  %p1019_p6 = scmp.lt.s32.totalorder %s1010_s23, %s1010_s23 }
  0x29   : > { %p1013_p1 = pnand %p1011_p0, %p999_p9  ;;  %p1020_p13 = por %p1019_p6, %p1018_p11 }
  0x2b   : > { %p1014_p12 = pneg %p1013_p1 }
  0x2d   : > { %p1021_p3 = pnand %p1020_p13, %p1014_p12 }
  0x2f   : > { %1024 = shalt.err (!%p1021_p3)
}
  0x30   : > { %933 = dma.hbm_to_vmem [thread:$0]  (!%p1242_p7), %s1661_s1, 64, %s164_s5, [#allocation6]  }
  0x31   : > { %s836_s10 = sshll.u32 %s1129_s18, 11  ;;  %s181_s11 = scalar_lea.vmem [#allocation2], %s770_s9 }
  0x32   : > { %s188_s12 = sshll.u32 %s181_s11, 4  ;;  %s1273_s20 = scalar_lea.hbm %s1660_s0, %s836_s10  ;;  %s1275_s12 = int_to_ptr.vmem [resolvable:$true] %s188_s12 }
  0x33   : > { %s1277_s6 = scalar_lea.sflag [#allocation3], %s177_s7  ;;  %s1025_s22 = scalar_lea.hbm %s1273_s20, 2048 }
  0x34   : > { %p1026_p6 = scmp.ne.s32.totalorder %s1273_s20, %s1025_s22  ;;  %p1678_p11 = scmp.ne.s32.totalorder %s1677_s8, 0 }
  0x35   : > { %s1030_s23 = scalar_lea.hbm %s1660_s0, 4096  ;;  %p1031_p7 = scmp.lt.u32.totalorder %s1273_s20, %s1660_s0 }
  0x36   : > { %p1027_p12 = pneg %p1678_p11  ;;  %p1032_p3 = scmp.lt.u32.totalorder %s1030_s23, %s1025_s22 }
  0x37   : > { %p1034_p9 = scmp.lt.u32.totalorder %s1025_s22, %s1273_s20 }
  0x38   : > { %p1028_p13 = pnand %p1027_p12, %p1026_p6  ;;  %p1033_p8 = por %p1032_p3, %p1031_p7 }
  0x3a   : > { %p1029_p1 = pneg %p1028_p13  ;;  %p1035_p10 = por %p1034_p9, %p1033_p8 }
  0x3c   : > { %p1036_p2 = pnand %p1035_p10, %p1029_p1 }
  0x3e   : > { %1039 = shalt.err (!%p1036_p2)
}
  0x3f   : > { %s1040_s7 = scalar_lea.vmem %s1275_s12, 2048  ;;  %s1132_s10 = smov [#allocation2]  }
  0x40   : > { %p1041_p4 = scmp.ne.s32.totalorder %s1275_s12, %s1040_s7  ;;  %s1045_s11 = sshll.u32 %s1132_s10, 4  ;;  %s1046_s11 = int_to_ptr.vmem [resolvable:$false] %s1045_s11 }
  0x41   : > { %s1047_s13 = scalar_lea.vmem %s1046_s11, 4096  ;;  %p1048_p6 = scmp.lt.s32.totalorder %s1275_s12, %s1046_s11 }
  0x42   : > { %p1043_p5 = pnand %p1041_p4, %p1027_p12  ;;  %p1049_p13 = scmp.lt.s32.totalorder %s1047_s13, %s1040_s7 }
  0x44   : > { %p1044_p0 = pneg %p1043_p5  ;;  %p1050_p7 = por %p1049_p13, %p1048_p6 }
  0x46   : > { %p1051_p3 = pnand %p1050_p7, %p1044_p0 }
  0x48   : > { %1054 = shalt.err (!%p1051_p3)
}
  0x49   : > { %s1133_s14 = smov 128   ;;  %s1134_s22 = smov 8  }
  0x4a   : > { %937 = dma.hbm_to_vmem [thread:$0]  (!%p1678_p11), %s1273_s20, 2048, %s1275_s12, %s1277_s6, %s1133_s14, %s1133_s14, %s1134_s22  }
  0x4b   : > { %p1679_p12 = scmp.ne.s32.totalorder %s1674_s29, 0 }
  0x4c   : > { %s1308_s5 = sand.u32 (!%p1679_p12), 1, %s1121_s16   ;;  %p1680_p1 = scmp.ne.s32.totalorder (!%p1679_p12), %s1671_s26, 0 }
  0x4d   : > { %200 = sbr.rel (%p1679_p12) target bundleno = 441 (0x1b9), region = 32  ;;  %s774_s9 = sshll.u32 (!%p1679_p12), %s1308_s5, 7 }
  0x4e   : > { %s203_s23 = scalar_lea.sflag (!%p1679_p12), [#allocation3], %s1308_s5  ;;  %s1312_s25 = scalar_lea.vmem (!%p1679_p12), [#allocation2], %s774_s9 }
  0x54   : > { %1100 = dma.done.wait (%p1680_p1), %s203_s23, 2048  }
  0x55   : > { %1102 = vsyncadd (%p1680_p1), %s203_s23, 4294965248  ;;  %p1681_p11 = scmp.eq.s32.totalorder %s1193_s19, 0 }
  0x57   : > { %1104 = dma.done.wait (%p1681_p11), [#allocation6], 64   ;;  %p1682_p8 = pmov %p1681_p11 }
  0x58   : > { %v262_v0 = vlaneseq  ;;  %v1135_v1 = vmov 0.0|0.0   ;;  %vm1136_vm0 = vmmov 0   ;;  %v1137_v2 = vmov 0.0   ;;  %v242_v7 = vld [vmem:[#allocation5] sm:$0xf]  ;;  %v247_v18 = vld [vmem:[%s1312_s25 + $0x8] sm:$0xff] }
  0x59   : > { %1106 = vsyncadd (%p1682_p8), [#allocation6], 4294967232  ;;  %890 = vmatprep.subr.bf16.mxu0 %v1135_v1  ;;  %887 = vmatprep.mubr.msk.f32.mxu0 %vm1136_vm0, %v1137_v2  ;;  %v243_v10 = vmul.f32 1.442695, %v242_v7  ;;  %v245_v13 = vld [vmem:[%s1662_s2] sm:$0xf] }
  0x5a   : > { %v263_v3 = vshrl.u32 %v262_v0, 7  ;;  %v490_v4 = vand.u32 127, %v262_v0  ;;  %v246_v17 = vld [vmem:[%s1312_s25] sm:$0xff]  ;;  %v248_v20 = vld [vmem:[%s1312_s25 + $0x10] sm:$0xff]  ;;  %v249_v21 = vld [vmem:[%s1312_s25 + $0x18] sm:$0xff]  ;;  %s776_s8 = sshll.u32 %s1308_s5, 9 }
  0x5b   : > { %995 = vpow2.f32 %v243_v10  ;;  %v250_v22 = vld [vmem:[%s1312_s25 + $0x20] sm:$0xff]  ;;  %v251_v27 = vld [vmem:[%s1312_s25 + $0x28] sm:$0xff]  ;;  %v252_v28 = vld [vmem:[%s1312_s25 + $0x30] sm:$0xff]  ;;  %s1379_s12 = scalar_lea.vmem [#allocation7], %s776_s8  ;;  %s777_s20 = sshll.u32 %s1308_s5, 3 }
  0x5c   : > { %v493_v5 = vmul.u32 16, %v263_v3  ;;  %v495_v6 = vadd.s32 1, %v263_v3  ;;  %v264_v12 = vsub.s32 0, %v263_v3  ;;  %v320_v14 = vsub.s32 1, %v263_v3  ;;  %v253_v29 = vld [vmem:[%s1312_s25 + $0x38] sm:$0xff]  ;;  %s239_s6 = scalar_lea.vmem [#allocation8], %s777_s20 }
  0x5d   : > { %v377_v15 = vsub.s32 2, %v263_v3  ;;  %v434_v16 = vsub.s32 3, %v263_v3  ;;  %s591_s30 = scalar_lea.sflag [#allocation4], %s1308_s5  ;;  %s596_s7 = scalar_lea.sflag [#allocation9], %s1308_s5 }
  0x5e   : > { %vm1323_vm1 = vcmp.ge.s32.totalorder %v490_v4, %v493_v5  ;;  %v496_v9 = vmul.u32 16, %v495_v6  ;;  %v1346_v24 = vrot.slane %v245_v13, %v264_v12  ;;  %v1348_v25 = vrot.slane %v245_v13, %v320_v14 }
  0x5f   : > { %v1350_v26 = vrot.slane %v245_v13, %v377_v15  ;;  %v1361_v33 = vrot.slane %v245_v13, %v434_v16 }
  0x60   : > { %vm1327_vm2 = vcmp.lt.s32.totalorder %v490_v4, %v496_v9 }
  0x61   : > { %vm498_vm3 = vmand %vm1323_vm1, %vm1327_vm2 }
  0x65   : > { %v996_v19 = vpop.eup %995 }
  0x66   : > { %v1344_v23 = vrot.slane %v996_v19, %v264_v12  ;;  %v1355_v30 = vrot.slane %v996_v19, %v320_v14  ;;  %v1357_v31 = vrot.slane %v996_v19, %v377_v15  ;;  %v1359_v32 = vrot.slane %v996_v19, %v434_v16 }
  0x68   : > { %v266_v34 = vmul.f32 %v1344_v23, %v246_v17  ;;  %v267_v35 = vmul.f32 %v1344_v23, %v247_v18  ;;  %v268_v36 = vmul.f32 %v1344_v23, %v248_v20  ;;  %v269_v37 = vmul.f32 %v1344_v23, %v249_v21 }
  0x69   : > { %v270_v38 = vmul.f32 %v1344_v23, %v250_v22  ;;  %v271_v39 = vmul.f32 %v1344_v23, %v251_v27  ;;  %v272_v40 = vmul.f32 %v1344_v23, %v252_v28  ;;  %v273_v41 = vmul.f32 %v1344_v23, %v253_v29 }
  0x6a   : > { %v286_v42 = vadd.f32 %v1346_v24, %v266_v34  ;;  %v287_v43 = vadd.f32 %v1346_v24, %v267_v35  ;;  %v288_v44 = vadd.f32 %v1346_v24, %v268_v36  ;;  %v289_v45 = vadd.f32 %v1346_v24, %v269_v37 }
  0x6b   : > { %v290_v46 = vadd.f32 %v1346_v24, %v270_v38  ;;  %v291_v47 = vadd.f32 %v1346_v24, %v271_v39  ;;  %v292_v48 = vadd.f32 %v1346_v24, %v272_v40  ;;  %v293_v49 = vadd.f32 %v1346_v24, %v273_v41 }
  0x6c   : > { %302 = vst [vmem:[%s1379_s12] sm:$0xff] %v286_v42  ;;  %303 = vst [vmem:[%s1379_s12 + $0x8] sm:$0xff] %v287_v43  ;;  %v322_v50 = vmul.f32 %v1355_v30, %v286_v42  ;;  %v323_v51 = vmul.f32 %v1355_v30, %v287_v43  ;;  %v324_v52 = vmul.f32 %v1355_v30, %v288_v44 }
  0x6d   : > { %304 = vst [vmem:[%s1379_s12 + $0x10] sm:$0xff] %v288_v44  ;;  %305 = vst [vmem:[%s1379_s12 + $0x18] sm:$0xff] %v289_v45  ;;  %v325_v53 = vmul.f32 %v1355_v30, %v289_v45  ;;  %v326_v54 = vmul.f32 %v1355_v30, %v290_v46  ;;  %v327_v55 = vmul.f32 %v1355_v30, %v291_v47  ;;  %v254_v45 = vld [vmem:[%s1312_s25 + $0x40] sm:$0xff] }
  0x6e   : > { %306 = vst [vmem:[%s1379_s12 + $0x20] sm:$0xff] %v290_v46  ;;  %307 = vst [vmem:[%s1379_s12 + $0x28] sm:$0xff] %v291_v47  ;;  %v328_v56 = vmul.f32 %v1355_v30, %v292_v48  ;;  %v329_v57 = vmul.f32 %v1355_v30, %v293_v49  ;;  %v342_v58 = vadd.f32 %v1348_v25, %v322_v50  ;;  %v255_v46 = vld [vmem:[%s1312_s25 + $0x48] sm:$0xff] }
  0x6f   : > { %308 = vst [vmem:[%s1379_s12 + $0x30] sm:$0xff] %v292_v48  ;;  %309 = vst [vmem:[%s1379_s12 + $0x38] sm:$0xff] %v293_v49  ;;  %v343_v59 = vadd.f32 %v1348_v25, %v323_v51  ;;  %v344_v60 = vadd.f32 %v1348_v25, %v324_v52  ;;  %v345_v61 = vadd.f32 %v1348_v25, %v325_v53  ;;  %v256_v51 = vld [vmem:[%s1312_s25 + $0x50] sm:$0xff]  ;;  %v257_v52 = vld [vmem:[%s1312_s25 + $0x58] sm:$0xff] }
  0x70   : > { %v346_v62 = vadd.f32 %v1348_v25, %v326_v54  ;;  %v347_v63 = vadd.f32 %v1348_v25, %v327_v55  ;;  %v348_v0 = vadd.f32 %v1348_v25, %v328_v56  ;;  %v349_v2 = vadd.f32 %v1348_v25, %v329_v57  ;;  %778 = vst [vmem:[%s1379_s12 + $0x80] sm:$0xff] %v342_v58  ;;  %v258_v55 = vld [vmem:[%s1312_s25 + $0x60] sm:$0xff]  ;;  %v259_v56 = vld [vmem:[%s1312_s25 + $0x68] sm:$0xff] }
  0x71   : > { %779 = vst [vmem:[%s1379_s12 + $0x88] sm:$0xff] %v343_v59  ;;  %v379_v3 = vmul.f32 %v1357_v31, %v342_v58  ;;  %v380_v4 = vmul.f32 %v1357_v31, %v343_v59  ;;  %780 = vst [vmem:[%s1379_s12 + $0x90] sm:$0xff] %v344_v60  ;;  %v381_v5 = vmul.f32 %v1357_v31, %v344_v60  ;;  %v260_v60 = vld [vmem:[%s1312_s25 + $0x70] sm:$0xff] }
  0x72   : > { %781 = vst [vmem:[%s1379_s12 + $0x98] sm:$0xff] %v345_v61  ;;  %v382_v6 = vmul.f32 %v1357_v31, %v345_v61  ;;  %782 = vst [vmem:[%s1379_s12 + $0xa0] sm:$0xff] %v346_v62  ;;  %v383_v7 = vmul.f32 %v1357_v31, %v346_v62  ;;  %v384_v9 = vmul.f32 %v1357_v31, %v347_v63  ;;  %v261_v61 = vld [vmem:[%s1312_s25 + $0x78] sm:$0xff] }
  0x73   : > { %783 = vst [vmem:[%s1379_s12 + $0xa8] sm:$0xff] %v347_v63  ;;  %784 = vst [vmem:[%s1379_s12 + $0xb0] sm:$0xff] %v348_v0  ;;  %v385_v10 = vmul.f32 %v1357_v31, %v348_v0  ;;  %v386_v12 = vmul.f32 %v1357_v31, %v349_v2  ;;  %v399_v13 = vadd.f32 %v1350_v26, %v379_v3 }
  0x74   : > { %785 = vst [vmem:[%s1379_s12 + $0xb8] sm:$0xff] %v349_v2  ;;  %v400_v14 = vadd.f32 %v1350_v26, %v380_v4  ;;  %v401_v15 = vadd.f32 %v1350_v26, %v381_v5  ;;  %v402_v16 = vadd.f32 %v1350_v26, %v382_v6  ;;  %v403_v17 = vadd.f32 %v1350_v26, %v383_v7 }
  0x75   : > { %v404_v18 = vadd.f32 %v1350_v26, %v384_v9  ;;  %v405_v19 = vadd.f32 %v1350_v26, %v385_v10  ;;  %v406_v20 = vadd.f32 %v1350_v26, %v386_v12  ;;  %794 = vst [vmem:[%s1379_s12 + $0x100] sm:$0xff] %v399_v13  ;;  %v436_v21 = vmul.f32 %v1359_v32, %v399_v13 }
  0x76   : > { %795 = vst [vmem:[%s1379_s12 + $0x108] sm:$0xff] %v400_v14  ;;  %v437_v22 = vmul.f32 %v1359_v32, %v400_v14  ;;  %796 = vst [vmem:[%s1379_s12 + $0x110] sm:$0xff] %v401_v15  ;;  %v438_v27 = vmul.f32 %v1359_v32, %v401_v15  ;;  %v439_v28 = vmul.f32 %v1359_v32, %v402_v16 }
  0x77   : > { %797 = vst [vmem:[%s1379_s12 + $0x118] sm:$0xff] %v402_v16  ;;  %798 = vst [vmem:[%s1379_s12 + $0x120] sm:$0xff] %v403_v17  ;;  %v440_v29 = vmul.f32 %v1359_v32, %v403_v17  ;;  %v441_v34 = vmul.f32 %v1359_v32, %v404_v18  ;;  %v442_v35 = vmul.f32 %v1359_v32, %v405_v19 }
  0x78   : > { %799 = vst [vmem:[%s1379_s12 + $0x128] sm:$0xff] %v404_v18  ;;  %800 = vst [vmem:[%s1379_s12 + $0x130] sm:$0xff] %v405_v19  ;;  %v443_v36 = vmul.f32 %v1359_v32, %v406_v20  ;;  %v456_v37 = vadd.f32 %v1361_v33, %v436_v21  ;;  %v457_v38 = vadd.f32 %v1361_v33, %v437_v22 }
  0x79   : > { %801 = vst [vmem:[%s1379_s12 + $0x138] sm:$0xff] %v406_v20  ;;  %v458_v39 = vadd.f32 %v1361_v33, %v438_v27  ;;  %v459_v40 = vadd.f32 %v1361_v33, %v439_v28  ;;  %v460_v41 = vadd.f32 %v1361_v33, %v440_v29  ;;  %v461_v42 = vadd.f32 %v1361_v33, %v441_v34 }
  0x7a   : > { %v1452_v43 = vadd.f32 %v1361_v33, %v442_v35  ;;  %v1455_v44 = vadd.f32 %v1361_v33, %v443_v36  ;;  %810 = vst [vmem:[%s1379_s12 + $0x180] sm:$0xff] %v456_v37  ;;  %811 = vst [vmem:[%s1379_s12 + $0x188] sm:$0xff] %v457_v38  ;;  %v501_v47 = vmul.f32 %v456_v37, %v456_v37 }
  0x7b   : > { %v502_v48 = vmul.f32 %v457_v38, %v457_v38  ;;  %812 = vst [vmem:[%s1379_s12 + $0x190] sm:$0xff] %v458_v39  ;;  %813 = vst [vmem:[%s1379_s12 + $0x198] sm:$0xff] %v459_v40  ;;  %v1463_v49 = vmul.f32 %v458_v39, %v458_v39  ;;  %v1465_v50 = vmul.f32 %v459_v40, %v459_v40 }
  0x7c   : > { %814 = vst [vmem:[%s1379_s12 + $0x1a0] sm:$0xff] %v460_v41  ;;  %815 = vst [vmem:[%s1379_s12 + $0x1a8] sm:$0xff] %v461_v42  ;;  %v1471_v53 = vmul.f32 %v460_v41, %v460_v41  ;;  %v1473_v54 = vmul.f32 %v461_v42, %v461_v42  ;;  %v274_v58 = vmul.f32 %v1344_v23, %v254_v45 }
  0x7d   : > { %816 = vst [vmem:[%s1379_s12 + $0x1b0] sm:$0xff] %v1452_v43  ;;  %817 = vst [vmem:[%s1379_s12 + $0x1b8] sm:$0xff] %v1455_v44  ;;  %v891_v57 = vpack.c.bf16 %v502_v48, %v501_v47  ;;  %v275_v59 = vmul.f32 %v1344_v23, %v255_v46  ;;  %v894_v62 = vpack.c.bf16 %v1465_v50, %v1463_v49 }
  0x7e   : > { %v897_v63 = vpack.c.bf16 %v1473_v54, %v1471_v53  ;;  %v276_v0 = vmul.f32 %v1344_v23, %v256_v51  ;;  %v277_v2 = vmul.f32 %v1344_v23, %v257_v52  ;;  %v294_v3 = vadd.f32 %v1346_v24, %v274_v58 }
  0x7f   : > { %892 = vmatpush3.bf16.xpose.msra.mxu0 %v891_v57  ;;  %v295_v4 = vadd.f32 %v1346_v24, %v275_v59  ;;  %v278_v5 = vmul.f32 %v1344_v23, %v258_v55  ;;  %v279_v6 = vmul.f32 %v1344_v23, %v259_v56  ;;  %v280_v10 = vmul.f32 %v1344_v23, %v260_v60 }
  0x80   : > { %893 = vmatprep.subr.bf16.mxu0 %v1135_v1  ;;  %v296_v7 = vadd.f32 %v1346_v24, %v276_v0  ;;  %v297_v9 = vadd.f32 %v1346_v24, %v277_v2  ;;  %v281_v12 = vmul.f32 %v1344_v23, %v261_v61  ;;  %310 = vst [vmem:[%s1379_s12 + $0x40] sm:$0xff] %v294_v3 }
  0x81   : > { %311 = vst [vmem:[%s1379_s12 + $0x48] sm:$0xff] %v295_v4  ;;  %v330_v13 = vmul.f32 %v1355_v30, %v294_v3  ;;  %v331_v14 = vmul.f32 %v1355_v30, %v295_v4  ;;  %v298_v15 = vadd.f32 %v1346_v24, %v278_v5  ;;  %v299_v16 = vadd.f32 %v1346_v24, %v279_v6 }
  0x82   : > { %312 = vst [vmem:[%s1379_s12 + $0x50] sm:$0xff] %v296_v7  ;;  %313 = vst [vmem:[%s1379_s12 + $0x58] sm:$0xff] %v297_v9  ;;  %v332_v17 = vmul.f32 %v1355_v30, %v296_v7  ;;  %v333_v23 = vmul.f32 %v1355_v30, %v297_v9  ;;  %v300_v18 = vadd.f32 %v1346_v24, %v280_v10 }
  0x83   : > { %v301_v19 = vadd.f32 %v1346_v24, %v281_v12  ;;  %v350_v20 = vadd.f32 %v1348_v25, %v330_v13  ;;  %v351_v21 = vadd.f32 %v1348_v25, %v331_v14  ;;  %314 = vst [vmem:[%s1379_s12 + $0x60] sm:$0xff] %v298_v15  ;;  %315 = vst [vmem:[%s1379_s12 + $0x68] sm:$0xff] %v299_v16 }
  0x84   : > { %v334_v22 = vmul.f32 %v1355_v30, %v298_v15  ;;  %v335_v27 = vmul.f32 %v1355_v30, %v299_v16  ;;  %v352_v28 = vadd.f32 %v1348_v25, %v332_v17  ;;  %v353_v29 = vadd.f32 %v1348_v25, %v333_v23  ;;  %316 = vst [vmem:[%s1379_s12 + $0x70] sm:$0xff] %v300_v18 }
  0x85   : > { %317 = vst [vmem:[%s1379_s12 + $0x78] sm:$0xff] %v301_v19  ;;  %v336_v24 = vmul.f32 %v1355_v30, %v300_v18  ;;  %v337_v34 = vmul.f32 %v1355_v30, %v301_v19  ;;  %786 = vst [vmem:[%s1379_s12 + $0xc0] sm:$0xff] %v350_v20  ;;  %v387_v35 = vmul.f32 %v1357_v31, %v350_v20  ;;  %v1138_v18 = vmov 1.0  }
  0x86   : > { %787 = vst [vmem:[%s1379_s12 + $0xc8] sm:$0xff] %v351_v21  ;;  %v388_v36 = vmul.f32 %v1357_v31, %v351_v21  ;;  %v354_v37 = vadd.f32 %v1348_v25, %v334_v22  ;;  %v355_v38 = vadd.f32 %v1348_v25, %v335_v27  ;;  %788 = vst [vmem:[%s1379_s12 + $0xd0] sm:$0xff] %v352_v28 }
  0x87   : > { %789 = vst [vmem:[%s1379_s12 + $0xd8] sm:$0xff] %v353_v29  ;;  %v389_v39 = vmul.f32 %v1357_v31, %v352_v28  ;;  %v390_v30 = vmul.f32 %v1357_v31, %v353_v29  ;;  %v356_v40 = vadd.f32 %v1348_v25, %v336_v24  ;;  %v357_v41 = vadd.f32 %v1348_v25, %v337_v34 }
  0x88   : > { %895 = vmatpush3.bf16.xpose.msra.mxu0 %v894_v62  ;;  %v407_v42 = vadd.f32 %v1350_v26, %v387_v35  ;;  %v408_v45 = vadd.f32 %v1350_v26, %v388_v36  ;;  %790 = vst [vmem:[%s1379_s12 + $0xe0] sm:$0xff] %v354_v37  ;;  %791 = vst [vmem:[%s1379_s12 + $0xe8] sm:$0xff] %v355_v38  ;;  %v391_v46 = vmul.f32 %v1357_v31, %v354_v37 }
  0x89   : > { %v392_v47 = vmul.f32 %v1357_v31, %v355_v38  ;;  %896 = vmatprep.subr.bf16.mxu0 %v1135_v1  ;;  %v409_v48 = vadd.f32 %v1350_v26, %v389_v39  ;;  %v410_v25 = vadd.f32 %v1350_v26, %v390_v30  ;;  %792 = vst [vmem:[%s1379_s12 + $0xf0] sm:$0xff] %v356_v40  ;;  %793 = vst [vmem:[%s1379_s12 + $0xf8] sm:$0xff] %v357_v41 }
  0x8a   : > { %v393_v49 = vmul.f32 %v1357_v31, %v356_v40  ;;  %v394_v50 = vmul.f32 %v1357_v31, %v357_v41  ;;  %802 = vst [vmem:[%s1379_s12 + $0x140] sm:$0xff] %v407_v42  ;;  %803 = vst [vmem:[%s1379_s12 + $0x148] sm:$0xff] %v408_v45  ;;  %v444_v51 = vmul.f32 %v1359_v32, %v407_v42 }
  0x8b   : > { %v445_v52 = vmul.f32 %v1359_v32, %v408_v45  ;;  %v411_v55 = vadd.f32 %v1350_v26, %v391_v46  ;;  %v412_v56 = vadd.f32 %v1350_v26, %v392_v47  ;;  %804 = vst [vmem:[%s1379_s12 + $0x150] sm:$0xff] %v409_v48  ;;  %805 = vst [vmem:[%s1379_s12 + $0x158] sm:$0xff] %v410_v25 }
  0x8c   : > { %v446_v57 = vmul.f32 %v1359_v32, %v409_v48  ;;  %v447_v31 = vmul.f32 %v1359_v32, %v410_v25  ;;  %v413_v58 = vadd.f32 %v1350_v26, %v393_v49  ;;  %v414_v59 = vadd.f32 %v1350_v26, %v394_v50 }
  0x8d   : > { %v464_v60 = vadd.f32 %v1361_v33, %v444_v51  ;;  %v465_v61 = vadd.f32 %v1361_v33, %v445_v52  ;;  %806 = vst [vmem:[%s1379_s12 + $0x160] sm:$0xff] %v411_v55  ;;  %807 = vst [vmem:[%s1379_s12 + $0x168] sm:$0xff] %v412_v56  ;;  %v448_v62 = vmul.f32 %v1359_v32, %v411_v55 }
  0x8e   : > { %v449_v0 = vmul.f32 %v1359_v32, %v412_v56  ;;  %v466_v2 = vadd.f32 %v1361_v33, %v446_v57  ;;  %v467_v3 = vadd.f32 %v1361_v33, %v447_v31  ;;  %808 = vst [vmem:[%s1379_s12 + $0x170] sm:$0xff] %v413_v58  ;;  %809 = vst [vmem:[%s1379_s12 + $0x178] sm:$0xff] %v414_v59 }
  0x8f   : > { %v450_v26 = vmul.f32 %v1359_v32, %v413_v58  ;;  %v451_v4 = vmul.f32 %v1359_v32, %v414_v59  ;;  %818 = vst [vmem:[%s1379_s12 + $0x1c0] sm:$0xff] %v464_v60  ;;  %819 = vst [vmem:[%s1379_s12 + $0x1c8] sm:$0xff] %v465_v61  ;;  %v468_v5 = vadd.f32 %v1361_v33, %v448_v62 }
  0x90   : > { %v469_v6 = vadd.f32 %v1361_v33, %v449_v0  ;;  %820 = vst [vmem:[%s1379_s12 + $0x1d0] sm:$0xff] %v466_v2  ;;  %821 = vst [vmem:[%s1379_s12 + $0x1d8] sm:$0xff] %v467_v3  ;;  %898 = vmatpush3.bf16.xpose.msra.mxu0 %v897_v63  ;;  %v507_v32 = vmul.f32 %v1452_v43, %v1452_v43  ;;  %v508_v10 = vmul.f32 %v1455_v44, %v1455_v44 }
  0x91   : > { %v470_v7 = vadd.f32 %v1361_v33, %v450_v26  ;;  %v471_v9 = vadd.f32 %v1361_v33, %v451_v4  ;;  %822 = vst [vmem:[%s1379_s12 + $0x1e0] sm:$0xff] %v468_v5  ;;  %899 = vmatprep.subr.bf16.mxu0 %v1135_v1  ;;  %v509_v13 = vmul.f32 %v464_v60, %v464_v60 }
  0x92   : > { %823 = vst [vmem:[%s1379_s12 + $0x1e8] sm:$0xff] %v469_v6  ;;  %v900_v12 = vpack.c.bf16 %v508_v10, %v507_v32  ;;  %v510_v33 = vmul.f32 %v465_v61, %v465_v61  ;;  %v511_v54 = vmul.f32 %v466_v2, %v466_v2  ;;  %v512_v63 = vmul.f32 %v467_v3, %v467_v3 }
  0x93   : > { %824 = vst [vmem:[%s1379_s12 + $0x1f0] sm:$0xff] %v470_v7  ;;  %825 = vst [vmem:[%s1379_s12 + $0x1f8] sm:$0xff] %v471_v9  ;;  %v513_v44 = vmul.f32 %v468_v5, %v468_v5  ;;  %v514_v14 = vmul.f32 %v469_v6, %v469_v6  ;;  %v515_v16 = vmul.f32 %v470_v7, %v470_v7 }
  0x94   : > { %v903_v53 = vpack.c.bf16 %v510_v33, %v509_v13  ;;  %v906_v43 = vpack.c.bf16 %v512_v63, %v511_v54  ;;  %v516_v17 = vmul.f32 %v471_v9, %v471_v9 }
  0x95   : > { %v909_v15 = vpack.c.bf16 %v514_v14, %v513_v44 }
  0x96   : > { %v912_v23 = vpack.c.bf16 %v516_v17, %v515_v16 }
  0x98   : > { %901 = vmatpush3.bf16.xpose.msra.mxu0 %v900_v12 }
  0x99   : > { %902 = vmatprep.subr.bf16.mxu0 %v1135_v1 }
  0xa0   : > { %904 = vmatpush3.bf16.xpose.msra.mxu0 %v903_v53 }
  0xa1   : > { %905 = vmatprep.subr.bf16.mxu0 %v1135_v1 }
  0xa8   : > { %907 = vmatpush3.bf16.xpose.msra.mxu0 %v906_v43 }
  0xa9   : > { %908 = vmatprep.subr.bf16.mxu0 %v1135_v1 }
  0xb0   : > { %910 = vmatpush3.bf16.xpose.msra.mxu0 %v909_v15 }
  0xb1   : > { %911 = vmatprep.subr.bf16.mxu0 %v1135_v1 }
  0xb8   : > { %913 = vmatpush3.bf16.xpose.msra.mxu0 %v912_v23 }
  0xbf   : > { %888 = vmatmul.mubr.msk.f32.vlgmr.msra.gmra.mrb[0].mxu0 %vm498_vm3, %v1138_v18 }
 0x192   : > { %v583_v19 = vpop.f32.mrb[0].mxu0 }
 0x193   : > { %v587_v20 = vmul.f32 -0.5, %v583_v19  ;;  %v889_v21 = vpop.f32.mrb[1].mxu0 }
 0x195   : > { %v828_v22 = vadd.f32 -14.703016, %v587_v20 }
 0x197   : > { %589 = vst [vmem:[%s239_s6] sm:$0xff] %v828_v22 }
 0x198   : > { %s837_s10 = sshll.u32 %s1193_s19, 11  ;;  %s625_s11 = sshll.u32 %s1379_s12, 4  ;;  %s626_s11 = int_to_ptr.vmem [resolvable:$true] %s625_s11 }
 0x199   : > { %s608_s22 = scalar_lea.hbm %s1663_s3, %s837_s10  ;;  %s1139_s9 = smov 2048  }
 0x19a   : > { %p1687_p9 = scmp.ne.s32.totalorder %s1672_s27, 0  ;;  %s1140_s23 = smov 4096  }
 0x19b   : > { %s1141_s25 = smov 16   ;;  %s1142_s26 = smov 128  }
 0x19c   : > { %920 = sst [smem:[#allocation11]] (%p1687_p9), %s1139_s9  ;;  %s1143_s29 = smov 8  }
 0x19d   : > { %921 = sst [smem:[#allocation11 + $0x1]] (%p1687_p9), %s1140_s23  ;;  %s1144_s8 = smov [#allocation10]  }
 0x19e   : > { %922 = sst [smem:[#allocation11 + $0x2]] (%p1687_p9), %s1141_s25  ;;  %s1145_s12 = smov 0  }
 0x19f   : > { %923 = sst [smem:[#allocation11 + $0x3]] (%p1687_p9), %s1142_s26  ;;  %s833_s20 = sshll.u32 %s1193_s19, 7 }
 0x1a0   : > { %924 = sst [smem:[#allocation11 + $0x4]] (%p1687_p9), %s1142_s26  ;;  %s654_s10 = sshll.u32 %s239_s6, 4  ;;  %s655_s10 = int_to_ptr.vmem [resolvable:$true] %s654_s10 }
 0x1a1   : > { %925 = sst [smem:[#allocation11 + $0x5]] (%p1687_p9), %s1143_s29  ;;  %s652_s9 = scalar_lea.hbm %s1664_s4, %s833_s20 }
 0x1a2   : > { %926 = dma.general (%p1687_p9), %s626_s11, 8192, %s608_s22, %s591_s30, %s1144_s8, [#allocation11], %s1145_s12, 0  }
 0x1a3   : > { %s1055_s23 = scalar_lea.vmem %s655_s10, 128  ;;  %s1146_s25 = smov [#allocation8]  }
 0x1a4   : > { %p1056_p10 = scmp.ne.s32.totalorder %s655_s10, %s1055_s23  ;;  %s1059_s26 = sshll.u32 %s1146_s25, 4  ;;  %s1060_s26 = int_to_ptr.vmem [resolvable:$false] %s1059_s26 }
 0x1a5   : > { %s1061_s29 = scalar_lea.vmem %s1060_s26, 256  ;;  %p1062_p5 = scmp.lt.s32.totalorder %s655_s10, %s1060_s26 }
 0x1a6   : > { %p1057_p2 = pnand %p1056_p10, %p1687_p9  ;;  %p1063_p0 = scmp.lt.s32.totalorder %s1061_s29, %s1055_s23 }
 0x1a8   : > { %p1058_p4 = pneg %p1057_p2  ;;  %p1064_p6 = por %p1063_p0, %p1062_p5 }
 0x1aa   : > { %p1065_p13 = pnand %p1064_p6, %p1058_p4 }
 0x1ac   : > { %1068 = shalt.err (!%p1065_p13)
}
 0x1ad   : > { %s1069_s19 = scalar_lea.hbm %s652_s9, 128  ;;  %s1073_s11 = scalar_lea.hbm %s1664_s4, 256 }
 0x1ae   : > { %p1070_p7 = scmp.ne.s32.totalorder %s652_s9, %s1069_s19  ;;  %p1074_p1 = scmp.lt.u32.totalorder %s652_s9, %s1664_s4 }
 0x1af   : > { %p1075_p11 = scmp.lt.u32.totalorder %s1073_s11, %s1069_s19  ;;  %p1077_p10 = scmp.lt.u32.totalorder %s1069_s19, %s652_s9 }
 0x1b0   : > { %p1071_p3 = pnand %p1070_p7, %p1687_p9 }
 0x1b1   : > { %p1076_p8 = por %p1075_p11, %p1074_p1 }
 0x1b2   : > { %p1072_p12 = pneg %p1071_p3 }
 0x1b3   : > { %p1078_p2 = por %p1077_p10, %p1076_p8 }
 0x1b5   : > { %p1079_p4 = pnand %p1078_p2, %p1072_p12 }
 0x1b7   : > { %1082 = shalt.err (!%p1079_p4)
}
 0x1b8   : > { %927 = dma.vmem_to_hbm [thread:$0]  (%p1687_p9), %s655_s10, 128, %s652_s9, %s596_s7  }
 0x1b9 PF: > { %s666_s12 = sand.u32 1, %s1117_s15   ;;  %p1688_p5 = scmp.ne.s32.totalorder %s1673_s28, 0 }
 0x1ba   : > { %p1689_p0 = scmp.ge.s32.totalorder %s1129_s18, 2  ;;  %s667_s20 = scalar_lea.sflag [#allocation4], %s666_s12 }
 0x1bc   : > { %p939_p6 = pnand %p1689_p0, %p1688_p5 }
 0x1be   : > { %1108 = dma.done.wait (!%p939_p6), %s667_s20, 8192  }
 0x1bf   : > { %1110 = vsyncadd (!%p939_p6), %s667_s20, 4294959104  ;;  %s676_s13 = scalar_lea.sflag [#allocation9], %s666_s12 }
 0x1c0   : > { %1112 = dma.done.wait (!%p939_p6), %s676_s13, 128  }
 0x1c1   : > { %1114 = vsyncadd (!%p939_p6), %s676_s13, 4294967168  ;;  %p22_p9 = scmp.ge.s32.totalorder %s1197_s21, 4   ;;  %s1690_s15 = smov %s1121_s16 }
 0x1c2   : > { %s1691_s16 = smov %s1125_s17  ;;  %s1692_s17 = smov %s1209_s24 }
 0x1c3   : > { %s1693_s18 = smov %s1197_s21  ;;  %24 = sbr.rel (!%p22_p9) target bundleno = 8 (0x8), region = 106 }
 0x1ca   :  { %681 = vsyncpa [#allocation3], 1 }
 0x1cb   :  { %683 = vsyncpa [#allocation3 + $0x1], 1 }
 0x1cc   :  { %684 = vsyncpa [#allocation6], 1 }
 0x1cd   :  { %685 = vsyncpa [#allocation4], 1 }
 0x1ce   :  { %687 = vsyncpa [#allocation4 + $0x1], 1 }
 0x1cf   :  { %688 = vsyncpa [#allocation9], 1 }
 0x1d0   :  { %690 = vsyncpa [#allocation9 + $0x1], 1 }

</bundles_post_ra>
